<compile_context>
chip_gen: v7x
topology: tpu7x:2x2x1
jax: 0.10.0
libtpu: 0.0.40
codegen_flags: <defaults>
</compile_context>

<pallas_src>
import numpy as np
import jax
import jax.numpy as jnp
from jax.experimental import pallas as pl
from jax.experimental.pallas import tpu as pltpu


# --------------------------------------------------------------------------
# Pallas kernel: one channel-major matmul + bias per batch element
# --------------------------------------------------------------------------
def _mobius_conv_kernel(p_ref, w_ref, b_ref, o_ref):
    # p_ref: (K, M)     im2col patches for one batch element (K = k*k*Cin, M = H*W)
    # w_ref: (Cout, K)  flattened expanded steerable kernel (VMEM-resident across grid)
    # b_ref: (Cout, 1)  expanded steerable bias (column -> broadcasts over lanes)
    # o_ref: (Cout, M)  channel-major, lane-dense output
    acc = jnp.dot(w_ref[...], p_ref[...], preferred_element_type=jnp.float32)
    acc = acc + b_ref[...]
    o_ref[...] = acc.astype(o_ref.dtype)


def mobius_conv_pallas(patches, w_flat, bias_col):
    """patches: (N, K, M), w_flat: (Cout, K), bias_col: (Cout, 1) -> (N, Cout, M)."""
    N, K, M = patches.shape
    Cout = w_flat.shape[0]
    return pl.pallas_call(
        _mobius_conv_kernel,
        out_shape=jax.ShapeDtypeStruct((N, Cout, M), patches.dtype),
        grid=(N,),
        in_specs=[
            pl.BlockSpec((None, K, M), lambda n: (n, 0, 0)),     # per-batch patches
            pl.BlockSpec((Cout, K), lambda n: (0, 0)),           # weight stays resident
            pl.BlockSpec((Cout, 1), lambda n: (0, 0)),           # bias stays resident
        ],
        out_specs=pl.BlockSpec((None, Cout, M), lambda n: (n, 0, 0)),
        compiler_params=pltpu.CompilerParams(
            dimension_semantics=("parallel",)),                  # v7x megacore over batch
    )(patches, w_flat, bias_col)


# --------------------------------------------------------------------------
# Plain-JAX glue: parameter init, kernel/bias expansion, transport padding
# (exact port of the PyTorch module's __init__/_expand_kernel/_expand_bias/
#  _transport_pad; the hot conv path lives in the Pallas kernel above)
# --------------------------------------------------------------------------
def init_params(key, in_fields, out_fields, ksize, dtype=jnp.float32):
    it, isf, ir = in_fields
    ot, osf, orr = out_fields
    std = 2.0 / np.sqrt(ksize ** 2 * (it + isf + 2 * ir + ot + osf + 2 * orr))
    params = {}
    keys = jax.random.split(key, 9)

    def rnd(k_, shape):
        return std * jax.random.normal(k_, shape, dtype)

    if ot and it:
        params['w_t2t'] = rnd(keys[0], (ot, it, ksize // 2 + 1, ksize))
    if osf and isf:
        params['w_s2s'] = rnd(keys[1], (osf, isf, ksize // 2 + 1, ksize))
    if osf and it:
        params['w_t2s'] = rnd(keys[2], (osf, it, ksize // 2, ksize))
    if ot and isf:
        params['w_s2t'] = rnd(keys[3], (ot, isf, ksize // 2, ksize))
    if orr and it:
        params['w_t2r'] = rnd(keys[4], (orr, it, ksize, ksize))
    if orr and isf:
        params['w_s2r'] = rnd(keys[5], (orr, isf, ksize, ksize))
    if ot and ir:
        params['w_r2t'] = rnd(keys[6], (ot, ir, ksize, ksize))
    if osf and ir:
        params['w_r2s'] = rnd(keys[7], (osf, ir, ksize, ksize))
    if orr and ir:
        params['w_r2r'] = rnd(keys[8], (orr, 2 * ir, ksize, ksize))
    if ot:
        params['b_triv'] = jnp.zeros((ot,), dtype)
    if orr:
        params['b_reg'] = jnp.zeros((orr,), dtype)
    return params


def expand_kernel(params, in_fields, out_fields, ksize, dtype=jnp.float32):
    it, isf, ir = in_fields
    ot, osf, orr = out_fields
    half = ksize // 2
    cin = it + isf + 2 * ir
    cout = ot + osf + 2 * orr
    bi1, bi2 = it, it + isf
    bo1, bo2 = ot, ot + osf
    ker = jnp.zeros((cout, cin, ksize, ksize), dtype)

    if ot and it:
        w = params['w_t2t']
        ker = ker.at[:bo1, :bi1, :half + 1].set(w)
        ker = ker.at[:bo1, :bi1, half + 1:].set(jnp.flip(w[:, :, :half], axis=2))
    if osf and isf:
        w = params['w_s2s']
        ker = ker.at[bo1:bo2, bi1:bi2, :half + 1].set(w)
        ker = ker.at[bo1:bo2, bi1:bi2, half + 1:].set(jnp.flip(w[:, :, :half], axis=2))
    if osf and it:
        w = params['w_t2s']
        ker = ker.at[bo1:bo2, :bi1, :half].set(w)
        ker = ker.at[bo1:bo2, :bi1, half + 1:].set(-jnp.flip(w, axis=2))
    if ot and isf:
        w = params['w_s2t']
        ker = ker.at[:bo1, bi1:bi2, :half].set(w)
        ker = ker.at[:bo1, bi1:bi2, half + 1:].set(-jnp.flip(w, axis=2))
    if orr and it:
        w = params['w_t2r']
        ker = ker.at[bo2::2, :bi1].set(w)
        ker = ker.at[bo2 + 1::2, :bi1].set(jnp.flip(w, axis=2))
    if orr and isf:
        w = params['w_s2r']
        ker = ker.at[bo2::2, bi1:bi2].set(w)
        ker = ker.at[bo2 + 1::2, bi1:bi2].set(-jnp.flip(w, axis=2))
    if ot and ir:
        w = params['w_r2t']
        ker = ker.at[:bo1, bi2::2].set(w)
        ker = ker.at[:bo1, bi2 + 1::2].set(jnp.flip(w, axis=2))
    if osf and ir:
        w = params['w_r2s']
        ker = ker.at[bo1:bo2, bi2::2].set(w)
        ker = ker.at[bo1:bo2, bi2 + 1::2].set(-jnp.flip(w, axis=2))
    if orr and ir:
        w = params['w_r2r']
        ker = ker.at[bo2::2, bi2:].set(w)
        ker = ker.at[bo2 + 1::2, bi2::2].set(jnp.flip(w[:, 1::2], axis=2))
        ker = ker.at[bo2 + 1::2, bi2 + 1::2].set(jnp.flip(w[:, ::2], axis=2))
    return ker


def expand_bias(params, out_fields, dtype=jnp.float32):
    ot, osf, orr = out_fields
    cout = ot + osf + 2 * orr
    bias = jnp.zeros((cout,), dtype)
    if ot:
        bias = bias.at[:ot].set(params['b_triv'])
    if orr:
        bias = bias.at[ot + osf::2].set(params['b_reg'])
        bias = bias.at[ot + osf + 1::2].set(params['b_reg'])
    return bias


def transport_pad(x, in_fields, ksize):
    """Parallel transport padding on the Mobius strip (NCHW: (N, C, W, L))."""
    it, isf, ir = in_fields
    N, C, W, L = x.shape
    half = ksize // 2
    bi1, bi2 = it, it + isf
    padded = jnp.zeros((N, C, W + ksize - 1, L + ksize - 1), x.dtype)
    padded = padded.at[:, :, half:half + W, half:half + L].set(x)
    if it:
        padded = padded.at[:, :bi1, half:half + W, :half].set(
            jnp.flip(x[:, :bi1, :, L - half:], axis=2))
        padded = padded.at[:, :bi1, half:half + W, half + L:].set(
            jnp.flip(x[:, :bi1, :, :half], axis=2))
    if isf:
        padded = padded.at[:, bi1:bi2, half:half + W, :half].set(
            -jnp.flip(x[:, bi1:bi2, :, L - half:], axis=2))
        padded = padded.at[:, bi1:bi2, half:half + W, half + L:].set(
            -jnp.flip(x[:, bi1:bi2, :, :half], axis=2))
    if ir:
        padded = padded.at[:, bi2::2, half:half + W, :half].set(
            jnp.flip(x[:, bi2 + 1::2, :, L - half:], axis=2))
        padded = padded.at[:, bi2 + 1::2, half:half + W, :half].set(
            jnp.flip(x[:, bi2::2, :, L - half:], axis=2))
        padded = padded.at[:, bi2::2, half:half + W, half + L:].set(
            jnp.flip(x[:, bi2 + 1::2, :, :half], axis=2))
        padded = padded.at[:, bi2 + 1::2, half:half + W, half + L:].set(
            jnp.flip(x[:, bi2::2, :, :half], axis=2))
    return padded


def mobius_conv_forward(x_nchw, params, in_fields, out_fields, ksize):
    """Full MobiusConv forward. Input/output are NCHW like the PyTorch module."""
    N, C, W, L = x_nchw.shape
    padded = transport_pad(x_nchw, in_fields, ksize)                  # (N, Cin, W+k-1, L+k-1)
    ker = expand_kernel(params, in_fields, out_fields, ksize, x_nchw.dtype)  # (Co, Ci, k, k)
    bias = expand_bias(params, out_fields, x_nchw.dtype)              # (Co,)
    cout = ker.shape[0]

    H, Wo = W, L                                                      # "valid" conv output dims
    # Wrapper-side im2col (channel-major): flat feature index = (kh*k + kw)*Cin + ci
    cols = [padded[:, :, kh:kh + H, kw:kw + Wo]
            for kh in range(ksize) for kw in range(ksize)]            # each (N, Cin, H, Wo)
    patches = jnp.concatenate(cols, axis=1).reshape(N, ksize * ksize * C, H * Wo)

    # Flatten weight to a dense 2-D tile matching the im2col ordering.
    w_flat = jnp.transpose(ker, (0, 2, 3, 1)).reshape(cout, ksize * ksize * C)  # (Co, K)
    bias_col = bias[:, None]                                          # (Co, 1)

    out = mobius_conv_pallas(patches, w_flat, bias_col)               # (N, Co, H*Wo) lane-dense
    return out.reshape(N, cout, H, Wo)                                # free trailing-dim reshape


# --------------------------------------------------------------------------
# Pure-JAX reference (for correctness check) using lax.conv_general_dilated
# --------------------------------------------------------------------------
def mobius_conv_reference(x_nchw, params, in_fields, out_fields, ksize):
    padded = transport_pad(x_nchw, in_fields, ksize)
    ker = expand_kernel(params, in_fields, out_fields, ksize, x_nchw.dtype)
    bias = expand_bias(params, out_fields, x_nchw.dtype)
    out = jax.lax.conv_general_dilated(
        padded, ker, window_strides=(1, 1), padding='VALID',
        dimension_numbers=('NCHW', 'OIHW', 'NCHW'),
        preferred_element_type=jnp.float32).astype(x_nchw.dtype)
    return out + bias[None, :, None, None]


# --------------------------------------------------------------------------
if __name__ == "__main__":
    # in_fields = (trivial, signflip, regular) multiplicities; same for out.
    in_fields = (1, 1, 1)    # -> C_in  = 1 + 1 + 2*1 = 4
    out_fields = (1, 1, 1)   # -> C_out = 1 + 1 + 2*1 = 4
    ksize = 3
    N, W, L = 2, 16, 16
    c_in = in_fields[0] + in_fields[1] + 2 * in_fields[2]

    key = jax.random.PRNGKey(0)
    k_param, k_x = jax.random.split(key)
    params = init_params(k_param, in_fields, out_fields, ksize)
    x = jax.random.normal(k_x, (N, c_in, W, L), jnp.float32)     # NCHW, like PyTorch

    out = mobius_conv_forward(x, params, in_fields, out_fields, ksize)
    out = jax.block_until_ready(out)

    ref = jax.block_until_ready(
        mobius_conv_reference(x, params, in_fields, out_fields, ksize))
    np.testing.assert_allclose(np.asarray(out), np.asarray(ref),
                               rtol=1e-3, atol=1e-3)

    assert out.shape == (N, out_fields[0] + out_fields[1] + 2 * out_fields[2], W, L)
    print("KERNEL_OK")
</pallas_src>

<mosaic_0001>
module attributes {stable_mosaic.version = 11 : i64} {
  func.func @_mobius_conv_kernel(%arg0: i32, %arg1: memref<1x36x256xf32, #tpu.memory_space<vmem>>, %arg2: memref<4x36xf32, #tpu.memory_space<vmem>>, %arg3: memref<4x1xf32, #tpu.memory_space<vmem>>, %arg4: memref<1x4x256xf32, #tpu.memory_space<vmem>>) attributes {dimension_semantics = [#tpu.dimension_semantics<parallel>], iteration_bounds = array<i64: 2>, scalar_prefetch = 0 : i64, scratch_operands = 0 : i64, tpu.core_type = #tpu.core_type<tc>, window_params = [{transform_indices = @transform_0, window_bounds = array<i64: 1, 36, 256>}, {pipeline_mode = #tpu.pipeline_mode<synchronous>, transform_indices = @transform_1, window_bounds = array<i64: 4, 36>}, {pipeline_mode = #tpu.pipeline_mode<synchronous>, transform_indices = @transform_2, window_bounds = array<i64: 4, 1>}, {transform_indices = @transform_3, window_bounds = array<i64: 1, 4, 256>}]} {
    %c0 = arith.constant 0 : index
    %c0_0 = arith.constant 0 : index
    %0 = vector.load %arg2[%c0, %c0_0] : memref<4x36xf32, #tpu.memory_space<vmem>>, vector<4x36xf32>
    %c0_1 = arith.constant 0 : index
    %c0_2 = arith.constant 0 : index
    %c0_3 = arith.constant 0 : index
    %1 = vector.load %arg1[%c0_1, %c0_2, %c0_3] : memref<1x36x256xf32, #tpu.memory_space<vmem>>, vector<1x36x256xf32>
    %2 = vector.shape_cast %1 : vector<1x36x256xf32> to vector<36x256xf32>
    %cst = arith.constant dense<0.000000e+00> : vector<4x256xf32>
    %3 = tpu.matmul %0, %2, %cst {dimension_numbers = #tpu.dot_dimension_numbers<[1], [0], [0], [1], [0, 0, 1, 1], [], []>} : vector<4x36xf32>, vector<36x256xf32>, vector<4x256xf32> -> vector<4x256xf32>
    %c0_4 = arith.constant 0 : index
    %c0_5 = arith.constant 0 : index
    %4 = vector.load %arg3[%c0_4, %c0_5] : memref<4x1xf32, #tpu.memory_space<vmem>>, vector<4x1xf32>
    %5 = vector.broadcast %4 : vector<4x1xf32> to vector<4x256xf32>
    %6 = arith.addf %3, %5 : vector<4x256xf32>
    %c0_6 = arith.constant 0 : index
    %c0_7 = arith.constant 0 : index
    %c0_8 = arith.constant 0 : index
    %7 = vector.load %arg4[%c0_6, %c0_7, %c0_8] : memref<1x4x256xf32, #tpu.memory_space<vmem>>, vector<1x4x256xf32>
    %8 = vector.shape_cast %7 : vector<1x4x256xf32> to vector<4x256xf32>
    %9 = vector.shape_cast %6 : vector<4x256xf32> to vector<1x4x256xf32>
    tpu.vector_store %arg4[%c0_6, %c0_7, %c0_8], %9 {strides = array<i32>} : memref<1x4x256xf32, #tpu.memory_space<vmem>>, vector<1x4x256xf32>,
    return
  }
  func.func @transform_0(%arg0: i32) -> (i32, i32, i32) {
    %c0_i32 = arith.constant 0 : i32
    %c0_i32_0 = arith.constant 0 : i32
    %c0_i32_1 = arith.constant 0 : i32
    return %arg0, %c0_i32, %c0_i32_0 : i32, i32, i32
  }
  func.func @transform_1(%arg0: i32) -> (i32, i32) {
    %c0_i32 = arith.constant 0 : i32
    %c0_i32_0 = arith.constant 0 : i32
    %c0_i32_1 = arith.constant 0 : i32
    return %c0_i32, %c0_i32_0 : i32, i32
  }
  func.func @transform_2(%arg0: i32) -> (i32, i32) {
    %c0_i32 = arith.constant 0 : i32
    %c0_i32_0 = arith.constant 0 : i32
    %c0_i32_1 = arith.constant 0 : i32
    return %c0_i32, %c0_i32_0 : i32, i32
  }
  func.func @transform_3(%arg0: i32) -> (i32, i32, i32) {
    %c0_i32 = arith.constant 0 : i32
    %c0_i32_0 = arith.constant 0 : i32
    %c0_i32_1 = arith.constant 0 : i32
    return %arg0, %c0_i32, %c0_i32_0 : i32, i32, i32
  }
}

</mosaic_0001>

<bundles_post_ra>
// kernel: tpu_custom_call.1
= control target key start
LH: loop header
LB: loop body
LE: loop exit
PB: predicated region body
PF: predicated region fallthrough
CT: control target
= control target key end

     0   :  { %8 = vsyncpa [#allocation3], 0  ;;  %s606_s0 = inlined_call_operand.vmem [shape: f32[2,36,256], index: 0, kind: input, shape index: {}]   ;;  %s607_s1 = inlined_call_operand.vmem [shape: f32[4,36], index: 1, kind: input, shape index: {}]   ;;  %s608_s2 = inlined_call_operand.vmem [shape: f32[4,1], index: 2, kind: input, shape index: {}]   ;;  %s609_s3 = inlined_call_operand.hbm [shape: f32[2,4,256], index: 3, kind: output, shape index: {}]  }
   0x1   :  { %10 = vsyncpa [#allocation3 + $0x1], 0  ;;  %s500_s12 = smov 0   ;;  %s502_s13 = smov 0  }
   0x2   :  { %s504_s14 = smov 0   ;;  %s506_s15 = smov 0  }
   0x3 LB: > { %s521_s16 = sadd.s32 4294967295, %s475_s15   ;;  %s347_s17 = sadd.s32 4294967294, %s475_s15   ;;  %s475_s15 = sphi %s506_s15, %s615_s15   ;;  %s471_s14 = sphi %s504_s14, %s614_s14   ;;  %s467_s13 = sphi %s502_s13, %s613_s13   ;;  %s463_s12 = sphi %s500_s12, %s612_s12  }
   0x4   : > { %s525_s18 = sadd.s32 1, %s475_s15   ;;  %s91_s19 = sadd.s32 1, %s471_s14 }
   0x5   : > { %s88_s20 = ssub.s32 %s475_s15, %s525_s18  ;;  %p101_p0 = scmp.ne.s32.totalorder %s471_s14, %s467_s13 }
   0x6   : > { %p89_p1 = scmp.eq.s32.totalorder %s88_s20, 0  ;;  %p102_p2 = scmp.eq.s32.totalorder %s521_s16, 1 }
   0x7   : > { %p107_p3 = scmp.ne.s32.totalorder %s467_s13, %s463_s12  ;;  %p108_p4 = scmp.eq.s32.totalorder %s347_s17, 1 }
   0x8   : > { %s536_s21 = scalar_select %p89_p1, %s471_s14, %s91_s19  }
   0x9   : > { %p538_p5 = por %p102_p2, %p101_p0  ;;  %p542_p6 = por %p108_p4, %p107_p3 }
   0xa   : > { %p350_p7 = scmp.ge.s32.totalorder %s475_s15, 1  ;;  %p140_p8 = scmp.lt.s32.totalorder %s475_s15, 3 }
   0xc   : > { %p141_p9 = pnand %p350_p7, %p140_p8 }
   0xd   : > { %p164_p10 = scmp.lt.s32.totalorder (!%p141_p9), %s521_s16, 1  ;;  %v477_v0 = vmov (!%p141_p9), 0.0   ;;  %v180_v1 = vld [vmem:[%s608_s2] sm:$0xf] (!%p141_p9)  ;;  %v478_v2 = vmov (!%p141_p9), 0   ;;  %vm190_vm0 = vcmask (!%p141_p9), 1043456  }
   0xe   : > { %144 = sbr.rel (%p141_p9) target bundleno = 270 (0x10e), region = 32  ;;  %261 = vmatprep.mubr.f32.mxu0 (!%p141_p9), %v477_v0  ;;  %412 = vset.pattern.permute.xlu0 (!%p141_p9), %v478_v2  ;;  %v169_v17 = vld [vmem:[%s607_s1] sm:$0xf] (!%p141_p9)  ;;  %vm186_vm1 = vcmask (!%p141_p9), 293888   ;;  %s161_s6 = sand.u32 (!%p141_p9), 1, %s467_s13  }
   0xf   : > { %183 = vperm.xlu0 (!%p141_p9), %412, %v180_v1   ;;  %s351_s7 = sshll.u32 (!%p141_p9), %s161_s6, 3  ;;  %s361_s8 = sshll.u32 (!%p141_p9), %s521_s16, 7 }
  0x10   : > { %s163_s9 = scalar_lea.vmem (!%p141_p9), [#allocation2], %s351_s7  ;;  %s564_s19 = scalar_lea.hbm (!%p141_p9), %s609_s3, %s361_s8 }
  0x11   : > { %s288_s10 = sshll.u32 (!%p141_p9), %s163_s9, 4  ;;  %s274_s20 = scalar_lea.sflag (!%p141_p9), [#allocation3], %s161_s6  ;;  %s566_s10 = int_to_ptr.vmem [resolvable:$true] %s288_s10 }
  0x12   : > { %s413_s24 = scalar_lea.vmem (!%p141_p9), %s566_s10, 128 }
  0x13   : > { %p414_p11 = scmp.ne.s32.totalorder (!%p141_p9), %s566_s10, %s413_s24 }
  0x15   : > { %s165_s26 = scalar_select %p164_p10, %s521_s16, 1 }
  0x16   : > { %p415_p12 = pnand %p414_p11, %p538_p5  ;;  %s479_s16 = smov [#allocation2]  }
  0x17   : > { %s370_s27 = smul.u32 80, %s165_s26  ;;  %s417_s25 = sshll.u32 %s479_s16, 4  ;;  %s418_s25 = int_to_ptr.vmem [resolvable:$false] %s417_s25 }
  0x18   : > { %p416_p13 = pneg %p415_p12  ;;  %s419_s26 = scalar_lea.vmem %s418_s25, 256 }
  0x19   : > { %s168_s30 = scalar_lea.vmem %s606_s0, %s370_s27  ;;  %p420_p0 = scmp.lt.s32.totalorder %s566_s10, %s418_s25 }
  0x1a   : > { %v171_v3 = vld [vmem:[%s168_s30 + $0x8] sm:$0xff]  ;;  %v173_v4 = vld [vmem:[%s168_s30 + $0x18] sm:$0xff]  ;;  %v170_v5 = vld [vmem:[%s168_s30] sm:$0xff]  ;;  %p421_p1 = scmp.lt.s32.totalorder %s419_s26, %s413_s24 }
  0x1b   : > { %v362_v6 = vpack.c.bf16 %v173_v4, %v171_v3  ;;  %v172_v7 = vld [vmem:[%s168_s30 + $0x10] sm:$0xff]  ;;  %v175_v8 = vld [vmem:[%s168_s30 + $0x28] sm:$0xff]  ;;  %v177_v9 = vld [vmem:[%s168_s30 + $0x38] sm:$0xff] }
  0x1c   : > { %v364_v10 = vpack.c.bf16 %v172_v7, %v170_v5  ;;  %v366_v11 = vpack.c.bf16 %v177_v9, %v175_v8  ;;  %v174_v12 = vld [vmem:[%s168_s30 + $0x20] sm:$0xff]  ;;  %v176_v13 = vld [vmem:[%s168_s30 + $0x30] sm:$0xff]  ;;  %v179_v15 = vld [vmem:[%s168_s30 + $0x48] sm:$0xf]  ;;  %p422_p2 = por %p421_p1, %p420_p0 }
  0x1d   : > { %363 = vmatprep.subr.bf16.mxu0 %v362_v6  ;;  %v368_v14 = vpack.c.bf16 %v176_v13, %v174_v12  ;;  %v178_v16 = vld [vmem:[%s168_s30 + $0x40] sm:$0xf] }
  0x1e   : > { %365 = vmatpush1.bf16.msra.mxu0 %v364_v10  ;;  %p423_p3 = pnand %p422_p2, %p416_p13 }
  0x1f   : > { %367 = vmatprep.subr.bf16.mxu0 %v366_v11 }
  0x22   : > { %369 = vmatpush1.bf16.msra.mxu0 %v368_v14 }
  0x23   : > { %353 = vmatprep.subr.msk.mxu0 %vm190_vm0, %v179_v15 }
  0x26   : > { %354 = vmatpush1.msk.msra.mxu0 %vm190_vm0, %v178_v16 }
  0x27   : > { %355 = vmatmul.mubr.msk.f32.vlgmr.msra.gmra.mrb[0].mxu0 %vm186_vm1, %v169_v17 }
  0x8e   : > { %v184_v18 = vpop.permute.xlu0 %183 }
  0xfa   : > { %v263_v19 = vpop.f32.mrb[0].mxu0 }
  0xfb   : > { %v264_v20 = vadd.f32 %v263_v19, %v184_v18  ;;  %v265_v21 = vpop.f32.mrb[1].mxu0 }
  0xfc   : > { %v266_v22 = vadd.f32 %v265_v21, %v184_v18 }
  0xfe   : > { %v270_v23 = vcombine.low %v264_v20, %v266_v22 }
 0x100   : > { %272 = vst [vmem:[%s163_s9] sm:$0xff] %v270_v23 }
 0x101   : > { %426 = shalt.err (!%p423_p3)
}
 0x102   : > { %s427_s27 = scalar_lea.hbm %s564_s19, 128  ;;  %s431_s30 = scalar_lea.hbm %s609_s3, 256 }
 0x103   : > { %p428_p4 = scmp.ne.s32.totalorder %s564_s19, %s427_s27  ;;  %p432_p9 = scmp.lt.u32.totalorder %s564_s19, %s609_s3 }
 0x104   : > { %p433_p10 = scmp.lt.u32.totalorder %s431_s30, %s427_s27  ;;  %p435_p12 = scmp.lt.u32.totalorder %s427_s27, %s564_s19 }
 0x105   : > { %p429_p7 = pnand %p428_p4, %p538_p5 }
 0x106   : > { %p434_p11 = por %p433_p10, %p432_p9 }
 0x107   : > { %p430_p8 = pneg %p429_p7 }
 0x108   : > { %p436_p13 = por %p435_p12, %p434_p11 }
 0x10a   : > { %p437_p0 = pnand %p436_p13, %p430_p8 }
 0x10c   : > { %440 = shalt.err (!%p437_p0)
}
 0x10d   : > { %371 = dma.vmem_to_hbm [thread:$0]  (%p538_p5), %s566_s10, 128, %s564_s19, %s274_s20  }
 0x10e PF: > { %p377_p1 = scmp.ge.s32.totalorder %s475_s15, 2  ;;  %s300_s6 = sand.u32 1, %s463_s12  }
 0x10f   : > { %s301_s7 = scalar_lea.sflag [#allocation3], %s300_s6 }
 0x110   : > { %p374_p2 = pnand %p377_p1, %p542_p6 }
 0x112   : > { %458 = dma.done.wait (!%p374_p2), %s301_s7, 128  }
 0x113   : > { %460 = vsyncadd (!%p374_p2), %s301_s7, 4294967168  ;;  %p13_p3 = scmp.ge.s32.totalorder %s525_s18, 4   ;;  %s612_s12 = smov %s467_s13 }
 0x114   : > { %s613_s13 = smov %s471_s14  ;;  %s614_s14 = smov %s536_s21 }
 0x115   : > { %s615_s15 = smov %s525_s18  ;;  %15 = sbr.rel (!%p13_p3) target bundleno = 3 (0x3), region = 67 }
 0x11c   :  { %306 = vsyncpa [#allocation3], 1 }
 0x11d   :  { %308 = vsyncpa [#allocation3 + $0x1], 1 }

</bundles_post_ra>
